<compile_context>
chip_gen: v7x
topology: tpu7x:2x2x1
jax: 0.10.0
libtpu: 0.0.40
codegen_flags: <defaults>
</compile_context>

<pallas_src>
import functools
import math

import jax
import jax.numpy as jnp
from jax.experimental import pallas as pl
from jax.experimental.pallas import tpu as pltpu


def _choose_tokens_per_step(n, e, itemsize):
    """Pick a sublane-dense per-step token count that fits VMEM everywhere."""
    t = 128                               # good default (review: T = 64..256)
    while t > 8 and t > n:                # shrink for tiny problems
        t //= 2
    t = max(t, 8)                         # multiple of 8 => dense f32 sublanes
    # staging (T,E) + double-buffered output (2*T*E): keep well under v7x VMEM
    while t > 8 and 3 * t * e * itemsize > (16 << 20):
        t //= 2
    return t


def _embed_block_kernel(ids_ref, table_hbm, out_ref, buf, sems, *,
                        tokens_per_step, in_flight, scale):
    """Gather `tokens_per_step` table rows via manual DMAs, then scale+store.

    ids_ref   : (N_pad,) int32 in SMEM (scalar prefetch)
    table_hbm : (V, E) table left in HBM (memory_space=pl.ANY)
    out_ref   : (T, E) output block for this grid step
    buf       : (T, E) VMEM staging buffer
    sems      : (K,) DMA semaphores (K row copies kept in flight)
    """
    step = pl.program_id(0)
    t_blk = tokens_per_step
    k = in_flight
    base = step * t_blk

    def start_row(t):
        row = ids_ref[base + t]
        pltpu.make_async_copy(
            table_hbm.at[pl.ds(row, 1), :],
            buf.at[pl.ds(t, 1), :],
            sems.at[t % k],
        ).start()

    # Prime the pipeline with K outstanding row gathers.
    @pl.loop(0, min(k, t_blk))
    def _(t):
        start_row(t)

    # Retire row t; immediately launch row t+K on the freed semaphore slot.
    @pl.loop(0, t_blk)
    def _(t):
        pltpu.make_async_copy(
            table_hbm.at[pl.ds(0, 1), :],       # same-size descriptor for wait
            buf.at[pl.ds(t, 1), :],
            sems.at[t % k],
        ).wait()

        @pl.when(t + k < t_blk)
        def _():
            start_row(t + k)

    # One dense (T, E) scale + store (scale in f32, cast back to table dtype).
    rows = buf[...].astype(jnp.float32) * jnp.float32(scale)
    out_ref[...] = rows.astype(out_ref.dtype)


def token_embedding(tokens, table, *, tokens_per_step=None, in_flight=8):
    """tokens: (B, S) int, table: (V, E) float -> (B, S, E) float."""
    b, s = tokens.shape
    v, e = table.shape
    n = b * s
    scale = math.sqrt(e)
    itemsize = jnp.dtype(table.dtype).itemsize

    if tokens_per_step is None:
        tokens_per_step = _choose_tokens_per_step(n, e, itemsize)
    t_blk = int(tokens_per_step)
    k_flight = max(1, min(in_flight, t_blk))

    # Token ids -> SMEM via scalar prefetch. Clamp so the data-dependent row
    # DMA can never go out of bounds (nn.Embedding would raise on OOB ids;
    # we clamp instead since an OOB DMA on TPU is unrecoverable).
    ids = jnp.clip(tokens.reshape(-1).astype(jnp.int32), 0, v - 1)
    n_pad = pl.cdiv(n, t_blk) * t_blk
    if n_pad != n:
        ids = jnp.pad(ids, (0, n_pad - n))   # pad with row 0, sliced off below

    out = pl.pallas_call(
        functools.partial(
            _embed_block_kernel,
            tokens_per_step=t_blk,
            in_flight=k_flight,
            scale=scale,
        ),
        out_shape=jax.ShapeDtypeStruct((n_pad, e), table.dtype),
        grid_spec=pltpu.PrefetchScalarGridSpec(
            num_scalar_prefetch=1,
            grid=(n_pad // t_blk,),
            in_specs=[
                # Table stays in HBM; rows are gathered manually in the body.
                pl.BlockSpec(memory_space=pl.ANY),
            ],
            # Sublane/lane-dense output block: (T, E), T % 8 == 0, last dim
            # equals the full array dim (no padding, no masked stores needed
            # beyond what the array's own width implies).
            out_specs=pl.BlockSpec((t_blk, e), lambda i, ids: (i, 0)),
            scratch_shapes=[
                pltpu.VMEM((t_blk, e), table.dtype),
                pltpu.SemaphoreType.DMA((k_flight,)),
            ],
        ),
        compiler_params=pltpu.CompilerParams(
            dimension_semantics=("parallel",)),   # v7x: shard over both TCs
        cost_estimate=pl.CostEstimate(
            flops=n_pad * e,
            transcendentals=0,
            bytes_accessed=2 * n_pad * e * itemsize + n_pad * 4,
        ),
    )(ids, table)

    if n_pad != n:
        out = out[:n]
    return out.reshape(b, s, e)


if __name__ == "__main__":
    vocab_size = 64
    emb_size = 32
    batch, seq = 2, 8

    key = jax.random.PRNGKey(0)
    k_tab, k_tok = jax.random.split(key)

    # Deterministic "parameters" (nn.Embedding weight ~ N(0, 1)).
    table = jax.random.normal(k_tab, (vocab_size, emb_size), dtype=jnp.float32)
    tokens = jax.random.randint(k_tok, (batch, seq), 0, vocab_size,
                                dtype=jnp.int32)

    out = token_embedding(tokens, table)
    out = jax.block_until_ready(out)

    # Pure-JAX reference: embedding lookup * sqrt(emb_size).
    ref = table[tokens] * jnp.float32(math.sqrt(emb_size))
    assert out.shape == (batch, seq, emb_size)
    assert out.dtype == jnp.float32
    assert jnp.allclose(out, ref, atol=1e-5, rtol=1e-5)

    print("KERNEL_OK")
</pallas_src>

<mosaic_0001>
module attributes {stable_mosaic.version = 11 : i64} {
  func.func @_embed_block_kernel(%arg0: i32, %arg1: memref<16xi32, #tpu.memory_space<smem>>, %arg2: memref<64x32xf32, #tpu.memory_space<any>>, %arg3: memref<16x32xf32, #tpu.memory_space<vmem>>, %arg4: memref<16x32xf32, #tpu.memory_space<vmem>>, %arg5: memref<8x!tpu.dma_semaphore, #tpu.memory_space<semaphore_mem>>) attributes {dimension_semantics = [#tpu.dimension_semantics<parallel>], iteration_bounds = array<i64: 1>, scalar_prefetch = 1 : i64, scratch_operands = 2 : i64, tpu.core_type = #tpu.core_type<tc>, window_params = [{}, {transform_indices = @transform_1, window_bounds = array<i64: 16, 32>}]} {
    %c16_i32 = arith.constant 16 : i32
    %0 = arith.muli %arg0, %c16_i32 : i32
    %c0_i32 = arith.constant 0 : i32
    %c8_i32 = arith.constant 8 : i32
    %1 = arith.addi %c0_i32, %c8_i32 : i32
    %c1_i32 = arith.constant 1 : i32
    scf.for %arg6 = %c0_i32 to %1 step %c1_i32  : i32 {
      %c1_i32_8 = arith.constant 1 : i32
      %7 = arith.muli %arg6, %c1_i32_8 : i32
      %c0_i32_9 = arith.constant 0 : i32
      %8 = arith.addi %c0_i32_9, %7 : i32
      %9 = arith.addi %0, %8 : i32
      %10 = arith.index_cast %9 : i32 to index
      %11 = memref.load %arg1[%10] : memref<16xi32, #tpu.memory_space<smem>>
      %c8_i32_10 = arith.constant 8 : i32
      %c0_i32_11 = arith.constant 0 : i32
      %12 = arith.cmpi eq, %c8_i32_10, %c0_i32_11 : i32
      %c1_i32_12 = arith.constant 1 : i32
      %13 = arith.select %12, %c1_i32_12, %c8_i32_10 : i32
      %14 = arith.remsi %8, %13 : i32
      %c0_i32_13 = arith.constant 0 : i32
      %15 = arith.cmpi ne, %14, %c0_i32_13 : i32
      %c0_i32_14 = arith.constant 0 : i32
      %16 = arith.cmpi slt, %14, %c0_i32_14 : i32
      %c0_i32_15 = arith.constant 0 : i32
      %17 = arith.cmpi slt, %13, %c0_i32_15 : i32
      %18 = arith.xori %16, %17 : i1
      %19 = arith.andi %18, %15 : i1
      %20 = arith.addi %14, %13 : i32
      %21 = arith.select %19, %20, %14 : i32
      %c0_i32_16 = arith.constant 0 : i32
      %22 = tpu.memref_slice %arg2[%11, %c0_i32_16] : memref<64x32xf32, #tpu.memory_space<any>> -> memref<1x32xf32, #tpu.memory_space<any>>
      %c0_i32_17 = arith.constant 0 : i32
      %23 = tpu.memref_slice %arg4[%8, %c0_i32_17] : memref<16x32xf32, #tpu.memory_space<vmem>> -> memref<1x32xf32, #tpu.memory_space<vmem>>
      %24 = tpu.memref_slice %arg5[%21] : memref<8x!tpu.dma_semaphore, #tpu.memory_space<semaphore_mem>> -> memref<1x!tpu.dma_semaphore, #tpu.memory_space<semaphore_mem>>
      %25 = tpu.memref_squeeze %24 : memref<1x!tpu.dma_semaphore, #tpu.memory_space<semaphore_mem>> -> memref<!tpu.dma_semaphore, #tpu.memory_space<semaphore_mem>>
      tpu.enqueue_dma source(%22 : memref<1x32xf32, #tpu.memory_space<any>>) target(%23 : memref<1x32xf32, #tpu.memory_space<vmem>>) target_semaphore(%25 : memref<!tpu.dma_semaphore, #tpu.memory_space<semaphore_mem>>)
    }
    %c8_i32_0 = arith.constant 8 : i32
    %c0_i32_1 = arith.constant 0 : i32
    %c16_i32_2 = arith.constant 16 : i32
    %2 = arith.addi %c0_i32_1, %c16_i32_2 : i32
    %c1_i32_3 = arith.constant 1 : i32
    scf.for %arg6 = %c0_i32_1 to %2 step %c1_i32_3  : i32 {
      %c1_i32_8 = arith.constant 1 : i32
      %7 = arith.muli %arg6, %c1_i32_8 : i32
      %c0_i32_9 = arith.constant 0 : i32
      %8 = arith.addi %c0_i32_9, %7 : i32
      %c8_i32_10 = arith.constant 8 : i32
      %c0_i32_11 = arith.constant 0 : i32
      %9 = arith.cmpi eq, %c8_i32_10, %c0_i32_11 : i32
      %c1_i32_12 = arith.constant 1 : i32
      %10 = arith.select %9, %c1_i32_12, %c8_i32_10 : i32
      %11 = arith.remsi %8, %10 : i32
      %c0_i32_13 = arith.constant 0 : i32
      %12 = arith.cmpi ne, %11, %c0_i32_13 : i32
      %c0_i32_14 = arith.constant 0 : i32
      %13 = arith.cmpi slt, %11, %c0_i32_14 : i32
      %c0_i32_15 = arith.constant 0 : i32
      %14 = arith.cmpi slt, %10, %c0_i32_15 : i32
      %15 = arith.xori %13, %14 : i1
      %16 = arith.andi %15, %12 : i1
      %17 = arith.addi %11, %10 : i32
      %18 = arith.select %16, %17, %11 : i32
      %c0_i32_16 = arith.constant 0 : i32
      %c0_i32_17 = arith.constant 0 : i32
      %19 = tpu.memref_slice %arg2[%c0_i32_16, %c0_i32_17] : memref<64x32xf32, #tpu.memory_space<any>> -> memref<1x32xf32, #tpu.memory_space<any>>
      %c0_i32_18 = arith.constant 0 : i32
      %20 = tpu.memref_slice %arg4[%8, %c0_i32_18] : memref<16x32xf32, #tpu.memory_space<vmem>> -> memref<1x32xf32, #tpu.memory_space<vmem>>
      %21 = tpu.memref_slice %arg5[%18] : memref<8x!tpu.dma_semaphore, #tpu.memory_space<semaphore_mem>> -> memref<1x!tpu.dma_semaphore, #tpu.memory_space<semaphore_mem>>
      %22 = tpu.memref_squeeze %21 : memref<1x!tpu.dma_semaphore, #tpu.memory_space<semaphore_mem>> -> memref<!tpu.dma_semaphore, #tpu.memory_space<semaphore_mem>>
      tpu.wait_dma2 semaphore(%22 : memref<!tpu.dma_semaphore, #tpu.memory_space<semaphore_mem>>) src(%19 : memref<1x32xf32, #tpu.memory_space<any>>) dst(%20 : memref<1x32xf32, #tpu.memory_space<vmem>>)
      %c8_i32_19 = arith.constant 8 : i32
      %23 = arith.addi %8, %c8_i32_19 : i32
      %c16_i32_20 = arith.constant 16 : i32
      %24 = arith.cmpi slt, %23, %c16_i32_20 : i32
      %25 = arith.extui %24 : i1 to i32
      %c0_i32_21 = arith.constant 0 : i32
      %26 = arith.cmpi ne, %25, %c0_i32_21 : i32
      scf.if %26 {
        %c8_i32_22 = arith.constant 8 : i32
        %27 = arith.addi %8, %c8_i32_22 : i32
        %28 = arith.addi %0, %27 : i32
        %29 = arith.index_cast %28 : i32 to index
        %30 = memref.load %arg1[%29] : memref<16xi32, #tpu.memory_space<smem>>
        %c8_i32_23 = arith.constant 8 : i32
        %c0_i32_24 = arith.constant 0 : i32
        %31 = arith.cmpi eq, %c8_i32_23, %c0_i32_24 : i32
        %c1_i32_25 = arith.constant 1 : i32
        %32 = arith.select %31, %c1_i32_25, %c8_i32_23 : i32
        %33 = arith.remsi %27, %32 : i32
        %c0_i32_26 = arith.constant 0 : i32
        %34 = arith.cmpi ne, %33, %c0_i32_26 : i32
        %c0_i32_27 = arith.constant 0 : i32
        %35 = arith.cmpi slt, %33, %c0_i32_27 : i32
        %c0_i32_28 = arith.constant 0 : i32
        %36 = arith.cmpi slt, %32, %c0_i32_28 : i32
        %37 = arith.xori %35, %36 : i1
        %38 = arith.andi %37, %34 : i1
        %39 = arith.addi %33, %32 : i32
        %40 = arith.select %38, %39, %33 : i32
        %c0_i32_29 = arith.constant 0 : i32
        %41 = tpu.memref_slice %arg2[%30, %c0_i32_29] : memref<64x32xf32, #tpu.memory_space<any>> -> memref<1x32xf32, #tpu.memory_space<any>>
        %c0_i32_30 = arith.constant 0 : i32
        %42 = tpu.memref_slice %arg4[%27, %c0_i32_30] : memref<16x32xf32, #tpu.memory_space<vmem>> -> memref<1x32xf32, #tpu.memory_space<vmem>>
        %43 = tpu.memref_slice %arg5[%40] : memref<8x!tpu.dma_semaphore, #tpu.memory_space<semaphore_mem>> -> memref<1x!tpu.dma_semaphore, #tpu.memory_space<semaphore_mem>>
        %44 = tpu.memref_squeeze %43 : memref<1x!tpu.dma_semaphore, #tpu.memory_space<semaphore_mem>> -> memref<!tpu.dma_semaphore, #tpu.memory_space<semaphore_mem>>
        tpu.enqueue_dma source(%41 : memref<1x32xf32, #tpu.memory_space<any>>) target(%42 : memref<1x32xf32, #tpu.memory_space<vmem>>) target_semaphore(%44 : memref<!tpu.dma_semaphore, #tpu.memory_space<semaphore_mem>>)
      } else {
      }
    }
    %c16_i32_4 = arith.constant 16 : i32
    %c0 = arith.constant 0 : index
    %c0_5 = arith.constant 0 : index
    %3 = vector.load %arg4[%c0, %c0_5] : memref<16x32xf32, #tpu.memory_space<vmem>>, vector<16x32xf32>
    %cst = arith.constant 5.65685415 : f32
    %4 = vector.broadcast %cst : f32 to vector<16x32xf32>
    %5 = arith.mulf %3, %4 : vector<16x32xf32>
    %c0_6 = arith.constant 0 : index
    %c0_7 = arith.constant 0 : index
    %6 = vector.load %arg3[%c0_6, %c0_7] : memref<16x32xf32, #tpu.memory_space<vmem>>, vector<16x32xf32>
    tpu.vector_store %arg3[%c0_6, %c0_7], %5 {strides = array<i32>} : memref<16x32xf32, #tpu.memory_space<vmem>>, vector<16x32xf32>,
    return
  }
  func.func @transform_1(%arg0: i32, %arg1: memref<16xi32, #tpu.memory_space<smem>>) -> (i32, i32) {
    %c0_i32 = arith.constant 0 : i32
    %c0_i32_0 = arith.constant 0 : i32
    return %arg0, %c0_i32 : i32, i32
  }
}

</mosaic_0001>

<bundles_post_ra>
// kernel: tpu_custom_call.1
= control target key start
LH: loop header
LB: loop body
LE: loop exit
PB: predicated region body
PF: predicated region fallthrough
CT: control target
= control target key end

     0   :  { %s436_s0 = inlined_call_operand.vmem [shape: s32[16], index: 0, kind: input, shape index: {}]   ;;  %s437_s1 = inlined_call_operand.vmem [shape: f32[64,32], index: 1, kind: input, shape index: {}]   ;;  %s438_s2 = inlined_call_operand.hbm [shape: f32[16,32], index: 2, kind: output, shape index: {}]  }
   0x1   :  { %s7_s11 = sshll.u32 %s436_s0, 4  ;;  %s8_s11 = int_to_ptr.vmem [resolvable:$true] %s7_s11 }
   0x2   :  { %s327_s12 = scalar_lea.vmem %s8_s11, 16  ;;  %p332_p1 = scmp.lt.s32.totalorder %s8_s11, %s8_s11 }
   0x3   :  { %p328_p0 = scmp.ne.s32.totalorder %s8_s11, %s327_s12  ;;  %p333_p2 = scmp.lt.s32.totalorder %s327_s12, %s327_s12 }
   0x5   :  { %p334_p3 = por %p333_p2, %p332_p1 }
   0x7   :  { %p335_p4 = pnand %p334_p3, %p328_p0 }
   0x9   :  { %338 = shalt.err (!%p335_p4)  }
   0xa   :  { %s383_s13 = smov [#allocation5]  }
   0xb   :  { %10 = dma.vmem_to_smem %s8_s11, 16, %s383_s13, [#allocation4] }
   0xc   :  { %369 = dma.done.wait [#allocation4], 16 }
   0xd   :  { %370 = vsyncadd [#allocation4], 4294967280 }
   0xe   :  { %12 = sfence }
   0xf   :  { %13 = vsyncpa [#allocation7], 0  ;;  %s375_s14 = smov 0  }
  0x10 LB: > { %s22_s15 = sld [smem:[#allocation5 + %s377_s14]]  ;;  %p23_p5 = scmp.lt.s32.totalorder %s377_s14, 0  ;;  %s377_s14 = sphi %s375_s14, %s20_s14  }
  0x11   : > { %s24_s0 = ssub.s32 0, %s377_s14  ;;  %s36_s23 = scalar_lea.vmem [#allocation2], %s377_s14 }
  0x12   : > { %s287_s16 = smin.u32 %s377_s14, %s24_s0 }
  0x13   : > { %s26_s17 = sand.u32 7, %s287_s16  }
  0x14   : > { %s27_s18 = ssub.s32 0, %s26_s17 }
  0x15   : > { %s440_s18 = smov (!%p23_p5, %s27_s18), %s26_s17 }
  0x16   : > { %s35_s21 = scalar_lea.vmem %s437_s1, %s22_s15  ;;  %p289_p6 = scmp.lt.s32.totalorder %s440_s18, 0 }
  0x17   : > { %s33_s22 = sadd.s32 8, %s440_s18  ;;  %v55_v0 = vld [vmem:[%s35_s21] sm:$0x1] }
  0x18   : > { %56 = vst [vmem:[%s36_s23] sm:$0x1] %v55_v0  ;;  %s442_s22 = smov (!%p289_p6, %s33_s22), %s440_s18 }
  0x19   : > { %s37_s24 = scalar_lea.sflag [#allocation3], %s442_s22 }
  0x1a   : > { %81 = vsyncadd %s37_s24, 16  ;;  %s20_s14 = sadd.s32 1, %s377_s14  }
  0x1b   : > { %p17_p7 = scmp.ge.s32.totalorder %s20_s14, 8  }
  0x1c   :  { %s408_s25 = smov (%p17_p7), 0  }
  0x1d   :  { %19 = sbr.rel (!%p17_p7) target bundleno = 16 (0x10), region = 132 }
  0x24 LB: > { %p88_p8 = scmp.lt.s32.totalorder %s381_s25, 0  ;;  %s89_s26 = ssub.s32 0, %s381_s25  ;;  %s381_s25 = sphi %s408_s25, %s87_s25  }
  0x25   : > { %s290_s27 = smin.u32 %s381_s25, %s89_s26 }
  0x26   : > { %s91_s28 = sand.u32 7, %s290_s27  }
  0x27   : > { %s92_s29 = ssub.s32 0, %s91_s28 }
  0x28   : > { %s444_s29 = smov (!%p88_p8, %s92_s29), %s91_s28 }
  0x29   : > { %p292_p9 = scmp.lt.s32.totalorder %s444_s29, 0  ;;  %s98_s30 = sadd.s32 8, %s444_s29 }
  0x2b   : > { %s446_s30 = smov (!%p292_p9, %s98_s30), %s444_s29 }
  0x2c   : > { %s100_s3 = scalar_lea.sflag [#allocation3], %s446_s30 }
  0x2d   : > { %371 = dma.done.wait %s100_s3, 16 }
  0x2e   : > { %372 = vsyncadd %s100_s3, 4294967280  ;;  %s104_s4 = sadd.s32 8, %s381_s25 }
  0x2f   : > { %p293_p10 = scmp.ge.s32.totalorder %s104_s4, 16 }
  0x30   : > { %s110_s5 = sld [smem:[#allocation5 + %s104_s4]] (!%p293_p10)  ;;  %p111_p11 = scmp.lt.s32.totalorder (!%p293_p10), %s104_s4, 0 }
  0x31   : > { %108 = sbr.rel (%p293_p10) target bundleno = 62 (0x3e), region = 49  ;;  %s112_s6 = ssub.s32 (!%p293_p10), 0, %s104_s4 }
  0x32   : > { %s294_s7 = smin.u32 (!%p293_p10), %s112_s6, %s104_s4  ;;  %s255_s14 = scalar_lea.vmem (!%p293_p10), [#allocation2], %s381_s25 }
  0x33   : > { %s114_s8 = sand.u32 (!%p293_p10), 7, %s294_s7  }
  0x34   : > { %s115_s9 = ssub.s32 (!%p293_p10), 0, %s114_s8 }
  0x36   : > { %s123_s12 = scalar_lea.vmem (!%p293_p10), %s437_s1, %s110_s5 }
  0x37   : > { %v143_v1 = vld [vmem:[%s123_s12] sm:$0x1] (!%p293_p10) }
  0x38   : > { %s448_s9 = smov (!%p111_p11, %s115_s9), %s114_s8  ;;  %298 = vst [vmem:[%s255_s14 + $0x8] sm:$0x1] %v143_v1 }
  0x39   : > { %p296_p12 = scmp.lt.s32.totalorder %s448_s9, 0  ;;  %s121_s13 = sadd.s32 8, %s448_s9 }
  0x3b   : > { %s450_s13 = smov (!%p296_p12, %s121_s13), %s448_s9 }
  0x3c   : > { %s125_s15 = scalar_lea.sflag [#allocation3], %s450_s13 }
  0x3d   : > { %169 = vsyncadd %s125_s15, 16 }
  0x3e PF: > { %s87_s25 = sadd.s32 1, %s381_s25  }
  0x3f   : > { %p84_p13 = scmp.ge.s32.totalorder %s87_s25, 16  }
  0x40   :  { %vm174_vm0 = vcmask (%p84_p13), 261120   ;;  %s384_s0 = smov (%p84_p13), [#allocation6]  }
  0x41   :  { %86 = sbr.rel (!%p84_p13) target bundleno = 36 (0x24), region = 143  ;;  %s182_s16 = sshll.u32 (%p84_p13), %s384_s0, 4  ;;  %s183_s16 = int_to_ptr.vmem [resolvable:$true] %s182_s16 }
  0x42   :  { %s339_s17 = scalar_lea.vmem (%p84_p13), %s183_s16, 256  ;;  %p344_p1 = scmp.lt.s32.totalorder (%p84_p13), %s183_s16, %s183_s16 }
  0x43   :  { %p340_p0 = scmp.ne.s32.totalorder (%p84_p13), %s183_s16, %s339_s17  ;;  %p345_p2 = scmp.lt.s32.totalorder (%p84_p13), %s339_s17, %s339_s17 }
  0x45   :  { %v170_v2 = vld [vmem:[#allocation2] sm:$0xff] (%p84_p13)  ;;  %v171_v3 = vld [vmem:[#allocation2 + $0x8] sm:$0xff] (%p84_p13)  ;;  %p346_p3 = por (%p84_p13), %p345_p2, %p344_p1 }
  0x46   :  { %v172_v4 = vmul.f32 (%p84_p13), 5.656854, %v170_v2  ;;  %v173_v5 = vmul.f32 (%p84_p13), 5.656854, %v171_v3 }
  0x47   :  { %p347_p4 = pnand (%p84_p13), %p346_p3, %p340_p0 }
  0x48   :  { %175 = vst.msk [vmem:[#allocation6] sm:$0xff] %vm174_vm0, %v172_v4  ;;  %176 = vst.msk [vmem:[#allocation6 + $0x8] sm:$0xff] %vm174_vm0, %v173_v5 }
  0x49   :  { %350 = shalt.err (!%p347_p4)
}
  0x4a   :  { %s351_s1 = scalar_lea.hbm %s438_s2, 256 }
  0x4b   :  { %p352_p5 = scmp.ne.s32.totalorder %s438_s2, %s351_s1  ;;  %p355_p6 = scmp.lt.u32.totalorder %s351_s1, %s438_s2 }
  0x4d   :  { %p357_p7 = pnand %p355_p6, %p352_p5 }
  0x4f   :  { %360 = shalt.err (!%p357_p7)
}
  0x50   :  { %s385_s24 = smov 128   ;;  %s386_s25 = smov 8  }
  0x51   :  { %188 = dma.vmem_to_hbm [thread:$0]  %s183_s16, 256, %s438_s2, [#allocation7], %s385_s24, %s385_s24, %s386_s25  }
  0x52   :  { %373 = dma.done.wait [#allocation7], 256  }
  0x53   :  { %374 = vsyncadd [#allocation7], 4294967040 }
  0x54   :  { %192 = vsyncpa [#allocation7], 1 }
  0x55   :  { %193 = vsyncmov [#allocation3] }
  0x58   :  { %s194_s28 = vpop.sfrf %193 }
  0x59   :  { %p299_p8 = scmp.ne.s32.totalorder %s194_s28, 0 }
  0x5b   :  { %198 = shalt.err (%p299_p8)  }
  0x5c   :  { %200 = vsyncmov [#allocation3 + $0x1] }
  0x5f   :  { %s201_s29 = vpop.sfrf %200 }
  0x60   :  { %p300_p9 = scmp.ne.s32.totalorder %s201_s29, 0 }
  0x62   :  { %205 = shalt.err (%p300_p9)  }
  0x63   :  { %207 = vsyncmov [#allocation3 + $0x2] }
  0x66   :  { %s208_s30 = vpop.sfrf %207 }
  0x67   :  { %p301_p10 = scmp.ne.s32.totalorder %s208_s30, 0 }
  0x69   :  { %212 = shalt.err (%p301_p10)  }
  0x6a   :  { %214 = vsyncmov [#allocation3 + $0x3] }
  0x6d   :  { %s215_s3 = vpop.sfrf %214 }
  0x6e   :  { %p302_p11 = scmp.ne.s32.totalorder %s215_s3, 0 }
  0x70   :  { %219 = shalt.err (%p302_p11)  }
  0x71   :  { %221 = vsyncmov [#allocation3 + $0x4] }
  0x74   :  { %s222_s2 = vpop.sfrf %221 }
  0x75   :  { %p303_p12 = scmp.ne.s32.totalorder %s222_s2, 0 }
  0x77   :  { %226 = shalt.err (%p303_p12)  }
  0x78   :  { %228 = vsyncmov [#allocation3 + $0x5] }
  0x7b   :  { %s229_s4 = vpop.sfrf %228 }
  0x7c   :  { %p304_p13 = scmp.ne.s32.totalorder %s229_s4, 0 }
  0x7e   :  { %233 = shalt.err (%p304_p13)  }
  0x7f   :  { %235 = vsyncmov [#allocation3 + $0x6] }
  0x82   :  { %s236_s5 = vpop.sfrf %235 }
  0x83   :  { %p305_p0 = scmp.ne.s32.totalorder %s236_s5, 0 }
  0x85   :  { %240 = shalt.err (%p305_p0)  }
  0x86   :  { %242 = vsyncmov [#allocation3 + $0x7] }
  0x89   :  { %s243_s6 = vpop.sfrf %242 }
  0x8a   :  { %p306_p1 = scmp.ne.s32.totalorder %s243_s6, 0 }
  0x8c   :  { %247 = shalt.err (%p306_p1)  }

</bundles_post_ra>
